<compile_context>
chip_gen: v7x
topology: tpu7x:2x2x1
jax: 0.10.0
libtpu: 0.0.40
codegen_flags: <defaults>
</compile_context>

<pallas_src>
from functools import partial

import jax
import jax.numpy as jnp
import numpy as np
from jax.experimental import pallas as pl
from jax.experimental.pallas import tpu as pltpu


def gprgnn_kernel(temp_ref, xt_ref, w1t_ref, b1_ref, w2t_ref, b2_ref, adjt_hbm,
                  out_ref, adj_vmem, dma_sem, *, K, C):
    # Kick off the adjacency DMA first; the MLP below runs underneath it.
    if K >= 1:
        adj_cp = pltpu.make_async_copy(adjt_hbm, adj_vmem, dma_sem)
        adj_cp.start()

    # Read all gamma scalars from SMEM before any DMA wait (sst->sld forwarding).
    gam = [temp_ref[k] for k in range(K + 1)]

    # lin1 + ReLU in transposed layout: [H, F] @ [F, N] -> [H, N] (N on lanes).
    # bf16 operands, f32 accumulation; bias/ReLU in f32.
    h = jnp.dot(w1t_ref[...], xt_ref[...], preferred_element_type=jnp.float32)
    h = jnp.maximum(h + b1_ref[...], 0.0)

    # lin2: [C, H] @ [H, N] -> [C, N].
    z = jnp.dot(w2t_ref[...], h.astype(jnp.bfloat16),
                preferred_element_type=jnp.float32) + b2_ref[...]

    # GPR propagation, two powers per dependent matmul via the stacked-[2C, N] trick.
    hidden = gam[0] * z                                   # f32 [C, N]
    if K >= 1:
        adj_cp.wait()
        m1 = adj_vmem[...]                                # bf16 [N, N], equals P^T

        # z^T (P^T)^1
        z1 = jnp.dot(z.astype(jnp.bfloat16), m1, preferred_element_type=jnp.float32)
        hidden = hidden + gam[1] * z1

        num_pairs = (K + 1) // 2
        s = jnp.concatenate([z, z1], axis=0)              # f32 [2C, N]
        if num_pairs > 1:
            # One-time (P^T)^2 at full MXU width; off the z dependency chain.
            m2 = jnp.dot(m1, m1, preferred_element_type=jnp.float32).astype(jnp.bfloat16)
            # K is static and small -> full unroll is fine.
            for j in range(1, num_pairs):
                s = jnp.dot(s.astype(jnp.bfloat16), m2,
                            preferred_element_type=jnp.float32)
                hidden = hidden + gam[2 * j] * s[:C] + gam[2 * j + 1] * s[C:]
        if (K + 1) % 2 == 1:                              # K even: one leftover power
            zk = jnp.dot(s[C:].astype(jnp.bfloat16), m1,
                         preferred_element_type=jnp.float32)
            hidden = hidden + gam[K] * zk

    # log_softmax over the class axis (axis 0 in the transposed layout), f32.
    m = jnp.max(hidden, axis=0, keepdims=True)
    shifted = hidden - m
    lse = jnp.log(jnp.sum(jnp.exp(shifted), axis=0, keepdims=True))
    out_ref[...] = shifted - lse                          # [C, N], lane-dense store


def gprgnn_forward(x, adj_t, w1, b1, w2, b2, temp, *, K):
    """adj_t is the precomputed, transposed, bf16 GCN-normalized adjacency (P^T)."""
    N, F = x.shape
    H = w1.shape[1]
    C = w2.shape[1]

    # Transposed, lane-dense operands; MXU feeds cast to bf16 once in the wrapper.
    xt = x.T.astype(jnp.bfloat16)              # [F, N]
    w1t = w1.T.astype(jnp.bfloat16)            # [H, F]
    w2t = w2.T.astype(jnp.bfloat16)            # [C, H]
    b1t = b1.reshape(H, 1).astype(jnp.float32) # [H, 1]
    b2t = b2.reshape(C, 1).astype(jnp.float32) # [C, 1]

    # Advisory cost estimate (scheduling hint only; adj_t is a kernel input, so its
    # construction cannot overlap the kernel -- hence it is precomputed per graph).
    flops = 2 * N * F * H + 2 * N * H * C + 2 * N * N * N + 2 * K * N * N * C
    bytes_accessed = (N * N * 2
                      + (N * F + F * H + H * C) * 2
                      + (H + C + N * C) * 4)
    cost = pl.CostEstimate(flops=flops, transcendentals=N * C,
                           bytes_accessed=bytes_accessed)

    # VMEM budget: adj scratch + (P^T)^2 temporaries + operands + headroom, capped at
    # the physical capacity of the current generation (v7x has only 64 MiB).
    needed = int(2 * N * N            # adj_t bf16 VMEM scratch
                 + 4 * N * N          # f32 (P^T)^2 intermediate
                 + 2 * N * N          # bf16 (P^T)^2
                 + (N * F + N * H) * 2 + 6 * N * C * 4
                 + (8 << 20))         # Mosaic internal scratch / headroom
    try:
        vmem_cap = int(pltpu.get_tpu_info().vmem_capacity_bytes)
    except Exception:
        vmem_cap = 64 << 20
    vmem_limit = max(16 << 20, min(needed, int(vmem_cap * 0.9)))

    vmem = pl.BlockSpec(memory_space=pltpu.MemorySpace.VMEM)
    out_t = pl.pallas_call(
        partial(gprgnn_kernel, K=K, C=C),
        out_shape=jax.ShapeDtypeStruct((C, N), jnp.float32),
        in_specs=[
            pl.BlockSpec(memory_space=pltpu.MemorySpace.SMEM),  # temp (gamma scalars)
            vmem,                                               # x_t
            vmem,                                               # w1_t
            vmem,                                               # b1_t
            vmem,                                               # w2_t
            vmem,                                               # b2_t
            pl.BlockSpec(memory_space=pl.ANY),                  # adj_t (manual DMA)
        ],
        out_specs=vmem,
        scratch_shapes=[
            pltpu.VMEM((N, N), jnp.bfloat16),                   # adj_t landing buffer
            pltpu.SemaphoreType.DMA(()),
        ],
        compiler_params=pltpu.CompilerParams(vmem_limit_bytes=vmem_limit),
        cost_estimate=cost,
    )(temp, xt, w1t, b1t, w2t, b2t, adj_t)

    return out_t.T                             # [N, C]


def gcn_norm_dense(edge_index, num_nodes):
    """Dense D^-1/2 (A + I) D^-1/2 from edge_index [2, E] (plain-JAX, per-graph)."""
    row, col = edge_index[0], edge_index[1]
    loop = jnp.arange(num_nodes, dtype=row.dtype)
    row = jnp.concatenate([row, loop])
    col = jnp.concatenate([col, loop])
    w = jnp.ones(row.shape[0], jnp.float32)
    deg = jnp.zeros(num_nodes, jnp.float32).at[row].add(w)
    dinv = jnp.where(deg > 0, jax.lax.rsqrt(deg), 0.0)
    norm = dinv[row] * w * dinv[col]
    adj = jnp.zeros((num_nodes, num_nodes), jnp.float32).at[row, col].add(norm)
    return adj                                  # P such that propagate(x) = P @ x


def precompute_adjacency_t(edge_index, num_nodes):
    """One-time per graph: transposed normalized adjacency P^T, bf16 for the MXU.
    Hoisted off the per-forward path (the XLA scatter dominated wall time before)."""
    return gcn_norm_dense(edge_index, num_nodes).T.astype(jnp.bfloat16)


def ppr_temp(K, alpha):
    t = alpha * (1.0 - alpha) ** np.arange(K + 1)
    t[-1] = (1.0 - alpha) ** K
    return jnp.asarray(t, dtype=jnp.float32)


def reference_forward_policy(x, adj_t_bf16, w1, b1, w2, b2, temp, K):
    """Plain-JAX reference with the kernel's MXU dtype policy (bf16 feeds, f32 acc)
    but the straightforward per-power loop (no A^2 restructuring)."""
    P = adj_t_bf16.T
    h = jnp.dot(x.astype(jnp.bfloat16), w1.astype(jnp.bfloat16),
                preferred_element_type=jnp.float32) + b1
    h = jnp.maximum(h, 0.0)
    z = jnp.dot(h.astype(jnp.bfloat16), w2.astype(jnp.bfloat16),
                preferred_element_type=jnp.float32) + b2
    hidden = temp[0] * z
    for k in range(K):
        z = jnp.dot(P, z.astype(jnp.bfloat16), preferred_element_type=jnp.float32)
        hidden = hidden + temp[k + 1] * z
    return jax.nn.log_softmax(hidden, axis=1)


def reference_forward_f32(x, edge_index, w1, b1, w2, b2, temp, K):
    """True-model f32 reference (bounds the bf16 drift over K propagations)."""
    P = gcn_norm_dense(edge_index, x.shape[0])
    h = jnp.maximum(x @ w1 + b1, 0.0)
    z = h @ w2 + b2
    hidden = temp[0] * z
    for k in range(K):
        z = P @ z
        hidden = hidden + temp[k + 1] * z
    return jax.nn.log_softmax(hidden, axis=1)


if __name__ == "__main__":
    # Small GPRGNN config (Init='PPR'). N=128 keeps the node axis lane-dense.
    N, F, H, C = 128, 32, 32, 8      # nodes, num_features, hidden, num_classes
    K, alpha = 10, 0.1
    E = 512                          # directed edges before symmetrization

    key = jax.random.PRNGKey(0)
    kx, ks, kd, kw1, kb1, kw2, kb2 = jax.random.split(key, 7)

    x = jax.random.normal(kx, (N, F), dtype=jnp.float32)

    src = jax.random.randint(ks, (E,), 0, N)
    dst = jax.random.randint(kd, (E,), 0, N)
    edge_index = jnp.stack([jnp.concatenate([src, dst]),
                            jnp.concatenate([dst, src])])  # undirected

    # Deterministic Linear params (stored as [in, out]).
    w1 = jax.random.uniform(kw1, (F, H), jnp.float32, -1, 1) / np.sqrt(F)
    b1 = jax.random.uniform(kb1, (1, H), jnp.float32, -1, 1) / np.sqrt(F)
    w2 = jax.random.uniform(kw2, (H, C), jnp.float32, -1, 1) / np.sqrt(H)
    b2 = jax.random.uniform(kb2, (1, C), jnp.float32, -1, 1) / np.sqrt(H)

    temp = ppr_temp(K, alpha)

    # One-time per graph (hoisted off the forward path).
    adj_t = jax.block_until_ready(precompute_adjacency_t(edge_index, N))

    out = gprgnn_forward(x, adj_t, w1, b1, w2, b2, temp, K=K)
    out = jax.block_until_ready(out)
    assert out.shape == (N, C)

    # Check against a reference with matched MXU dtype policy (tight tolerance) ...
    ref_policy = reference_forward_policy(x, adj_t, w1, b1, w2, b2, temp, K)
    np.testing.assert_allclose(np.asarray(out), np.asarray(ref_policy),
                               rtol=3e-2, atol=3e-2)
    # ... and against the true f32 model (looser bound on bf16 drift over K powers).
    ref_f32 = reference_forward_f32(x, edge_index, w1, b1, w2, b2, temp, K)
    np.testing.assert_allclose(np.asarray(out), np.asarray(ref_f32),
                               rtol=1e-1, atol=1e-1)

    print("KERNEL_OK")
</pallas_src>

<mosaic_0001>
module attributes {stable_mosaic.version = 11 : i64} {
  func.func @gprgnn_kernel(%arg0: memref<11xf32, #tpu.memory_space<smem>>, %arg1: memref<32x128xbf16, #tpu.memory_space<vmem>>, %arg2: memref<32x32xbf16, #tpu.memory_space<vmem>>, %arg3: memref<32x1xf32, #tpu.memory_space<vmem>>, %arg4: memref<8x32xbf16, #tpu.memory_space<vmem>>, %arg5: memref<8x1xf32, #tpu.memory_space<vmem>>, %arg6: memref<128x128xbf16, #tpu.memory_space<any>>, %arg7: memref<8x128xf32, #tpu.memory_space<vmem>>, %arg8: memref<128x128xbf16, #tpu.memory_space<vmem>>, %arg9: memref<!tpu.dma_semaphore, #tpu.memory_space<semaphore_mem>>) attributes {dimension_semantics = [], scalar_prefetch = 0 : i64, scratch_operands = 2 : i64, tpu.core_type = #tpu.core_type<tc>} {
    tpu.enqueue_dma source(%arg6 : memref<128x128xbf16, #tpu.memory_space<any>>) target(%arg8 : memref<128x128xbf16, #tpu.memory_space<vmem>>) target_semaphore(%arg9 : memref<!tpu.dma_semaphore, #tpu.memory_space<semaphore_mem>>)
    %c0 = arith.constant 0 : index
    %0 = memref.load %arg0[%c0] : memref<11xf32, #tpu.memory_space<smem>>
    %c1 = arith.constant 1 : index
    %1 = memref.load %arg0[%c1] : memref<11xf32, #tpu.memory_space<smem>>
    %c2 = arith.constant 2 : index
    %2 = memref.load %arg0[%c2] : memref<11xf32, #tpu.memory_space<smem>>
    %c3 = arith.constant 3 : index
    %3 = memref.load %arg0[%c3] : memref<11xf32, #tpu.memory_space<smem>>
    %c4 = arith.constant 4 : index
    %4 = memref.load %arg0[%c4] : memref<11xf32, #tpu.memory_space<smem>>
    %c5 = arith.constant 5 : index
    %5 = memref.load %arg0[%c5] : memref<11xf32, #tpu.memory_space<smem>>
    %c6 = arith.constant 6 : index
    %6 = memref.load %arg0[%c6] : memref<11xf32, #tpu.memory_space<smem>>
    %c7 = arith.constant 7 : index
    %7 = memref.load %arg0[%c7] : memref<11xf32, #tpu.memory_space<smem>>
    %c8 = arith.constant 8 : index
    %8 = memref.load %arg0[%c8] : memref<11xf32, #tpu.memory_space<smem>>
    %c9 = arith.constant 9 : index
    %9 = memref.load %arg0[%c9] : memref<11xf32, #tpu.memory_space<smem>>
    %c10 = arith.constant 10 : index
    %10 = memref.load %arg0[%c10] : memref<11xf32, #tpu.memory_space<smem>>
    %c0_0 = arith.constant 0 : index
    %c0_1 = arith.constant 0 : index
    %11 = vector.load %arg2[%c0_0, %c0_1] : memref<32x32xbf16, #tpu.memory_space<vmem>>, vector<32x32xbf16>
    %c0_2 = arith.constant 0 : index
    %c0_3 = arith.constant 0 : index
    %12 = vector.load %arg1[%c0_2, %c0_3] : memref<32x128xbf16, #tpu.memory_space<vmem>>, vector<32x128xbf16>
    %cst = arith.constant dense<0.000000e+00> : vector<32x128xf32>
    %13 = tpu.matmul %11, %12, %cst {dimension_numbers = #tpu.dot_dimension_numbers<[1], [0], [0], [1], [0, 0, 1, 1], [], []>} : vector<32x32xbf16>, vector<32x128xbf16>, vector<32x128xf32> -> vector<32x128xf32>
    %c0_4 = arith.constant 0 : index
    %c0_5 = arith.constant 0 : index
    %14 = vector.load %arg3[%c0_4, %c0_5] : memref<32x1xf32, #tpu.memory_space<vmem>>, vector<32x1xf32>
    %15 = vector.broadcast %14 : vector<32x1xf32> to vector<32x128xf32>
    %16 = arith.addf %13, %15 : vector<32x128xf32>
    %cst_6 = arith.constant 0.000000e+00 : f32
    %17 = vector.broadcast %cst_6 : f32 to vector<32x128xf32>
    %18 = arith.maximumf %16, %17 : vector<32x128xf32>
    %c0_7 = arith.constant 0 : index
    %c0_8 = arith.constant 0 : index
    %19 = vector.load %arg4[%c0_7, %c0_8] : memref<8x32xbf16, #tpu.memory_space<vmem>>, vector<8x32xbf16>
    %20 = arith.truncf %18 : vector<32x128xf32> to vector<32x128xbf16>
    %cst_9 = arith.constant dense<0.000000e+00> : vector<8x128xf32>
    %21 = tpu.matmul %19, %20, %cst_9 {dimension_numbers = #tpu.dot_dimension_numbers<[1], [0], [0], [1], [0, 0, 1, 1], [], []>} : vector<8x32xbf16>, vector<32x128xbf16>, vector<8x128xf32> -> vector<8x128xf32>
    %c0_10 = arith.constant 0 : index
    %c0_11 = arith.constant 0 : index
    %22 = vector.load %arg5[%c0_10, %c0_11] : memref<8x1xf32, #tpu.memory_space<vmem>>, vector<8x1xf32>
    %23 = vector.broadcast %22 : vector<8x1xf32> to vector<8x128xf32>
    %24 = arith.addf %21, %23 : vector<8x128xf32>
    %25 = vector.broadcast %0 : f32 to vector<8x128xf32>
    %26 = arith.mulf %25, %24 : vector<8x128xf32>
    tpu.wait_dma2 semaphore(%arg9 : memref<!tpu.dma_semaphore, #tpu.memory_space<semaphore_mem>>) src(%arg6 : memref<128x128xbf16, #tpu.memory_space<any>>) dst(%arg8 : memref<128x128xbf16, #tpu.memory_space<vmem>>)
    %c0_12 = arith.constant 0 : index
    %c0_13 = arith.constant 0 : index
    %27 = vector.load %arg8[%c0_12, %c0_13] : memref<128x128xbf16, #tpu.memory_space<vmem>>, vector<128x128xbf16>
    %28 = arith.truncf %24 : vector<8x128xf32> to vector<8x128xbf16>
    %cst_14 = arith.constant dense<0.000000e+00> : vector<8x128xf32>
    %29 = tpu.matmul %28, %27, %cst_14 {dimension_numbers = #tpu.dot_dimension_numbers<[1], [0], [0], [1], [0, 0, 1, 1], [], []>} : vector<8x128xbf16>, vector<128x128xbf16>, vector<8x128xf32> -> vector<8x128xf32>
    %30 = vector.broadcast %1 : f32 to vector<8x128xf32>
    %31 = arith.mulf %30, %29 : vector<8x128xf32>
    %32 = arith.addf %26, %31 : vector<8x128xf32>
    %33 = tpu.concatenate %24, %29 in 0 : vector<8x128xf32>, vector<8x128xf32> -> vector<16x128xf32>
    %cst_15 = arith.constant dense<0.000000e+00> : vector<128x128xf32>
    %34 = tpu.matmul %27, %27, %cst_15 {dimension_numbers = #tpu.dot_dimension_numbers<[1], [0], [0], [1], [0, 0, 1, 1], [], []>} : vector<128x128xbf16>, vector<128x128xbf16>, vector<128x128xf32> -> vector<128x128xf32>
    %35 = arith.truncf %34 : vector<128x128xf32> to vector<128x128xbf16>
    %36 = arith.truncf %33 : vector<16x128xf32> to vector<16x128xbf16>
    %cst_16 = arith.constant dense<0.000000e+00> : vector<16x128xf32>
    %37 = tpu.matmul %36, %35, %cst_16 {dimension_numbers = #tpu.dot_dimension_numbers<[1], [0], [0], [1], [0, 0, 1, 1], [], []>} : vector<16x128xbf16>, vector<128x128xbf16>, vector<16x128xf32> -> vector<16x128xf32>
    %38 = vector.extract_strided_slice %37 {offsets = [0, 0], sizes = [8, 128], strides = [1, 1]} : vector<16x128xf32> to vector<8x128xf32>
    %39 = vector.broadcast %2 : f32 to vector<8x128xf32>
    %40 = arith.mulf %39, %38 : vector<8x128xf32>
    %41 = arith.addf %32, %40 : vector<8x128xf32>
    %42 = vector.extract_strided_slice %37 {offsets = [8, 0], sizes = [8, 128], strides = [1, 1]} : vector<16x128xf32> to vector<8x128xf32>
    %43 = vector.broadcast %3 : f32 to vector<8x128xf32>
    %44 = arith.mulf %43, %42 : vector<8x128xf32>
    %45 = arith.addf %41, %44 : vector<8x128xf32>
    %46 = arith.truncf %37 : vector<16x128xf32> to vector<16x128xbf16>
    %cst_17 = arith.constant dense<0.000000e+00> : vector<16x128xf32>
    %47 = tpu.matmul %46, %35, %cst_17 {dimension_numbers = #tpu.dot_dimension_numbers<[1], [0], [0], [1], [0, 0, 1, 1], [], []>} : vector<16x128xbf16>, vector<128x128xbf16>, vector<16x128xf32> -> vector<16x128xf32>
    %48 = vector.extract_strided_slice %47 {offsets = [0, 0], sizes = [8, 128], strides = [1, 1]} : vector<16x128xf32> to vector<8x128xf32>
    %49 = vector.broadcast %4 : f32 to vector<8x128xf32>
    %50 = arith.mulf %49, %48 : vector<8x128xf32>
    %51 = arith.addf %45, %50 : vector<8x128xf32>
    %52 = vector.extract_strided_slice %47 {offsets = [8, 0], sizes = [8, 128], strides = [1, 1]} : vector<16x128xf32> to vector<8x128xf32>
    %53 = vector.broadcast %5 : f32 to vector<8x128xf32>
    %54 = arith.mulf %53, %52 : vector<8x128xf32>
    %55 = arith.addf %51, %54 : vector<8x128xf32>
    %56 = arith.truncf %47 : vector<16x128xf32> to vector<16x128xbf16>
    %cst_18 = arith.constant dense<0.000000e+00> : vector<16x128xf32>
    %57 = tpu.matmul %56, %35, %cst_18 {dimension_numbers = #tpu.dot_dimension_numbers<[1], [0], [0], [1], [0, 0, 1, 1], [], []>} : vector<16x128xbf16>, vector<128x128xbf16>, vector<16x128xf32> -> vector<16x128xf32>
    %58 = vector.extract_strided_slice %57 {offsets = [0, 0], sizes = [8, 128], strides = [1, 1]} : vector<16x128xf32> to vector<8x128xf32>
    %59 = vector.broadcast %6 : f32 to vector<8x128xf32>
    %60 = arith.mulf %59, %58 : vector<8x128xf32>
    %61 = arith.addf %55, %60 : vector<8x128xf32>
    %62 = vector.extract_strided_slice %57 {offsets = [8, 0], sizes = [8, 128], strides = [1, 1]} : vector<16x128xf32> to vector<8x128xf32>
    %63 = vector.broadcast %7 : f32 to vector<8x128xf32>
    %64 = arith.mulf %63, %62 : vector<8x128xf32>
    %65 = arith.addf %61, %64 : vector<8x128xf32>
    %66 = arith.truncf %57 : vector<16x128xf32> to vector<16x128xbf16>
    %cst_19 = arith.constant dense<0.000000e+00> : vector<16x128xf32>
    %67 = tpu.matmul %66, %35, %cst_19 {dimension_numbers = #tpu.dot_dimension_numbers<[1], [0], [0], [1], [0, 0, 1, 1], [], []>} : vector<16x128xbf16>, vector<128x128xbf16>, vector<16x128xf32> -> vector<16x128xf32>
    %68 = vector.extract_strided_slice %67 {offsets = [0, 0], sizes = [8, 128], strides = [1, 1]} : vector<16x128xf32> to vector<8x128xf32>
    %69 = vector.broadcast %8 : f32 to vector<8x128xf32>
    %70 = arith.mulf %69, %68 : vector<8x128xf32>
    %71 = arith.addf %65, %70 : vector<8x128xf32>
    %72 = vector.extract_strided_slice %67 {offsets = [8, 0], sizes = [8, 128], strides = [1, 1]} : vector<16x128xf32> to vector<8x128xf32>
    %73 = vector.broadcast %9 : f32 to vector<8x128xf32>
    %74 = arith.mulf %73, %72 : vector<8x128xf32>
    %75 = arith.addf %71, %74 : vector<8x128xf32>
    %76 = vector.extract_strided_slice %67 {offsets = [8, 0], sizes = [8, 128], strides = [1, 1]} : vector<16x128xf32> to vector<8x128xf32>
    %77 = arith.truncf %76 : vector<8x128xf32> to vector<8x128xbf16>
    %cst_20 = arith.constant dense<0.000000e+00> : vector<8x128xf32>
    %78 = tpu.matmul %77, %27, %cst_20 {dimension_numbers = #tpu.dot_dimension_numbers<[1], [0], [0], [1], [0, 0, 1, 1], [], []>} : vector<8x128xbf16>, vector<128x128xbf16>, vector<8x128xf32> -> vector<8x128xf32>
    %79 = vector.broadcast %10 : f32 to vector<8x128xf32>
    %80 = arith.mulf %79, %78 : vector<8x128xf32>
    %81 = arith.addf %75, %80 : vector<8x128xf32>
    %cst_21 = arith.constant dense<0xFF800000> : vector<128xf32>
    %82 = vector.multi_reduction <maximumf>, %81, %cst_21 [0] : vector<8x128xf32> to vector<128xf32>
    %83 = vector.shape_cast %82 : vector<128xf32> to vector<1x128xf32>
    %84 = vector.broadcast %83 : vector<1x128xf32> to vector<8x128xf32>
    %85 = arith.subf %81, %84 : vector<8x128xf32>
    %86 = math.exp %85 : vector<8x128xf32>
    %cst_22 = arith.constant dense<0.000000e+00> : vector<128xf32>
    %87 = vector.multi_reduction <add>, %86, %cst_22 [0] : vector<8x128xf32> to vector<128xf32>
    %88 = vector.shape_cast %87 : vector<128xf32> to vector<1x128xf32>
    %89 = math.log %88 : vector<1x128xf32>
    %90 = vector.broadcast %89 : vector<1x128xf32> to vector<8x128xf32>
    %91 = arith.subf %85, %90 : vector<8x128xf32>
    %c0_23 = arith.constant 0 : index
    %c0_24 = arith.constant 0 : index
    %92 = vector.load %arg7[%c0_23, %c0_24] : memref<8x128xf32, #tpu.memory_space<vmem>>, vector<8x128xf32>
    tpu.vector_store %arg7[%c0_23, %c0_24], %91 {strides = array<i32>} : memref<8x128xf32, #tpu.memory_space<vmem>>, vector<8x128xf32>,
    return
  }
}

</mosaic_0001>

<bundles_post_ra>
// kernel: tpu_custom_call.1
= control target key start
LH: loop header
LB: loop body
LE: loop exit
PB: predicated region body
PF: predicated region fallthrough
CT: control target
= control target key end

     0   :  { %12 = vsyncpa [#allocation7], 0  ;;  %s1500_s0 = inlined_call_operand.hbm [shape: f32[11], index: 0, kind: input, shape index: {}]   ;;  %s1501_s1 = inlined_call_operand.hbm [shape: bf16[32,128], index: 1, kind: input, shape index: {}]   ;;  %s1502_s2 = inlined_call_operand.hbm [shape: bf16[32,32], index: 2, kind: input, shape index: {}]   ;;  %s1503_s3 = inlined_call_operand.vmem [shape: f32[32,1], index: 3, kind: input, shape index: {}]   ;;  %s1504_s4 = inlined_call_operand.hbm [shape: bf16[8,32], index: 4, kind: input, shape index: {}]   ;;  %s1505_s5 = inlined_call_operand.vmem [shape: f32[8,1], index: 5, kind: input, shape index: {}]   ;;  %s1506_s6 = inlined_call_operand.vmem [shape: bf16[128,128], index: 6, kind: input, shape index: {}]   ;;  %s1507_s7 = inlined_call_operand.hbm [shape: f32[8,128], index: 7, kind: output, shape index: {}]  }
   0x1   :  { %13 = vsyncpa [#allocation5], 0 }
   0x2   :  { %14 = vsyncpa [#allocation10], 0 }
   0x3   :  { %15 = vsyncpa [#allocation6], 0  ;;  %s1149_s24 = smov [#allocation9]   ;;  %s1150_s26 = smov [#allocation8]  }
   0x4   :  { %s41_s25 = sshll.u32 %s1149_s24, 4  ;;  %s29_s27 = sshll.u32 %s1150_s26, 4  ;;  %s42_s25 = int_to_ptr.vmem [resolvable:$true] %s41_s25  ;;  %s30_s27 = int_to_ptr.vmem [resolvable:$true] %s29_s27 }
   0x5   :  { %s1041_s30 = scalar_lea.hbm %s1502_s2, 256 }
   0x6   :  { %p1042_p0 = scmp.ne.s32.totalorder %s1502_s2, %s1041_s30  ;;  %p1045_p1 = scmp.lt.u32.totalorder %s1041_s30, %s1502_s2 }
   0x8   :  { %p1047_p2 = pnand %p1045_p1, %p1042_p0 }
   0xa   :  { %1050 = shalt.err (!%p1047_p2)
}
   0xb   :  { %s1051_s12 = scalar_lea.vmem %s42_s25, 256  ;;  %p1056_p4 = scmp.lt.s32.totalorder %s42_s25, %s42_s25 }
   0xc   :  { %p1052_p3 = scmp.ne.s32.totalorder %s42_s25, %s1051_s12  ;;  %p1057_p5 = scmp.lt.s32.totalorder %s1051_s12, %s1051_s12 }
   0xe   :  { %p1058_p6 = por %p1057_p5, %p1056_p4 }
  0x10   :  { %p1059_p7 = pnand %p1058_p6, %p1052_p3 }
  0x12   :  { %1062 = shalt.err (!%p1059_p7)
}
  0x13   :  { %s1151_s13 = smov 64   ;;  %s1152_s14 = smov 4  }
  0x14   :  { %47 = dma.hbm_to_vmem [thread:$0]  %s1502_s2, 256, %s42_s25, [#allocation10], %s1151_s13, %s1151_s13, %s1152_s14  }
  0x15   :  { %s1063_s19 = scalar_lea.hbm %s1500_s0, 16 }
  0x16   :  { %p1064_p8 = scmp.ne.s32.totalorder %s1500_s0, %s1063_s19  ;;  %p1067_p9 = scmp.lt.u32.totalorder %s1063_s19, %s1500_s0 }
  0x18   :  { %p1069_p10 = pnand %p1067_p9, %p1064_p8 }
  0x1a   :  { %1072 = shalt.err (!%p1069_p10)
}
  0x1b   :  { %s1153_s24 = smov [#allocation4]   ;;  %s1073_s29 = scalar_lea.hbm %s1501_s1, 256 }
  0x1c   :  { %23 = dma.hbm_to_smem %s1500_s0, 16, %s1153_s24, [#allocation7]  }
  0x1d   :  { %p1074_p11 = scmp.ne.s32.totalorder %s1501_s1, %s1073_s29  ;;  %p1077_p12 = scmp.lt.u32.totalorder %s1073_s29, %s1501_s1 }
  0x1f   :  { %p1079_p13 = pnand %p1077_p12, %p1074_p11 }
  0x21   :  { %1082 = shalt.err (!%p1079_p13)
}
  0x22   :  { %s1083_s11 = scalar_lea.vmem %s30_s27, 256  ;;  %p1088_p1 = scmp.lt.s32.totalorder %s30_s27, %s30_s27 }
  0x23   :  { %p1084_p0 = scmp.ne.s32.totalorder %s30_s27, %s1083_s11  ;;  %p1089_p2 = scmp.lt.s32.totalorder %s1083_s11, %s1083_s11 }
  0x25   :  { %p1090_p3 = por %p1089_p2, %p1088_p1 }
  0x27   :  { %p1091_p4 = pnand %p1090_p3, %p1084_p0 }
  0x29   :  { %1094 = shalt.err (!%p1091_p4)
}
  0x2a   :  { %35 = dma.hbm_to_vmem [thread:$0]  %s1501_s1, 256, %s30_s27, [#allocation5], %s1151_s13, %s1151_s13, %s1152_s14  }
  0x2b   :  { %s1154_s15 = smov [#allocation11]   ;;  %s1095_s19 = scalar_lea.hbm %s1504_s4, 64 }
  0x2c   :  { %s56_s16 = sshll.u32 %s1154_s15, 4  ;;  %p1096_p5 = scmp.ne.s32.totalorder %s1504_s4, %s1095_s19  ;;  %s57_s16 = int_to_ptr.vmem [resolvable:$true] %s56_s16 }
  0x2d   :  { %p1099_p6 = scmp.lt.u32.totalorder %s1095_s19, %s1504_s4 }
  0x2f   :  { %p1101_p7 = pnand %p1099_p6, %p1096_p5 }
  0x31   :  { %1104 = shalt.err (!%p1101_p7)
}
  0x32   :  { %s1105_s24 = scalar_lea.vmem %s57_s16, 64  ;;  %p1110_p9 = scmp.lt.s32.totalorder %s57_s16, %s57_s16 }
  0x33   :  { %p1106_p8 = scmp.ne.s32.totalorder %s57_s16, %s1105_s24  ;;  %p1111_p10 = scmp.lt.s32.totalorder %s1105_s24, %s1105_s24 }
  0x35   :  { %p1112_p11 = por %p1111_p10, %p1110_p9 }
  0x37   :  { %p1113_p12 = pnand %p1112_p11, %p1106_p8 }
  0x39   :  { %1116 = shalt.err (!%p1113_p12)
}
  0x3a   :  { %59 = dma.hbm_to_vmem [thread:$0]  %s1504_s4, 64, %s57_s16, [#allocation10]  }
  0x3b   :  { %1139 = dma.done.wait [#allocation7], 16  }
  0x3c   :  { %1140 = vsyncadd [#allocation7], 4294967280 }
  0x3d   :  { %1141 = dma.done.wait [#allocation5], 256  }
  0x3e   :  { %1142 = vsyncadd [#allocation5], 4294967040 }
  0x3f   :  { %1143 = dma.done.wait [#allocation10], 320  }
  0x40   :  { %1144 = vsyncadd [#allocation10], 4294966976 }
  0x41   :  { %74 = sfence }
  0x42   :  { %v1250_v0 = vld [vmem:[%s1506_s6] sm:$0xff]  ;;  %v1255_v1 = vld [vmem:[%s1506_s6 + $0x8] sm:$0xff]  ;;  %v1260_v2 = vld [vmem:[%s1506_s6 + $0x10] sm:$0xff] }
  0x43   :  { %v1265_v3 = vld [vmem:[%s1506_s6 + $0x18] sm:$0xff]  ;;  %v1270_v4 = vld [vmem:[%s1506_s6 + $0x20] sm:$0xff]  ;;  %v1275_v5 = vld [vmem:[%s1506_s6 + $0x28] sm:$0xff] }
  0x44   :  { %v1280_v6 = vld [vmem:[%s1506_s6 + $0x30] sm:$0xff]  ;;  %v1285_v7 = vld [vmem:[%s1506_s6 + $0x38] sm:$0xff] }
  0x45   :  { %131 = vsyncadd [#allocation3], 1024  ;;  %s1287_s16 = sld [smem:[#allocation4 + $0x1]]  ;;  %s1289_s17 = sld [smem:[#allocation4 + $0x2]]  ;;  %v1033_v8 = vld [vmem:[#allocation8] sm:$0xff]   ;;  %v1034_v9 = vld [vmem:[#allocation8 + $0x8] sm:$0xff]  }
  0x46   :  { %s1291_s18 = sld [smem:[#allocation4 + $0x3]]  ;;  %s1293_s19 = sld [smem:[#allocation4 + $0x4]]  ;;  %853 = vmatprep.subr.bf16.mxu1 %v1033_v8  ;;  %v1035_v10 = vld [vmem:[#allocation9] sm:$0xff]   ;;  %vm197_vm0 = vcmask 261120   ;;  %v151_v11 = vld [vmem:[%s1503_s3] sm:$0xff]  ;;  %v1155_v12 = vmov 0  }
  0x47   :  { %s1295_s20 = sld [smem:[#allocation4 + $0x5]]  ;;  %s1297_s21 = sld [smem:[#allocation4 + $0x6]]  ;;  %854 = vmatpush3.bf16.msra.mxu1 %v1033_v8  ;;  %857 = vmatprep.mubr.msk.bf16.mxu1 %vm197_vm0, %v1035_v10  ;;  %v153_v13 = vld [vmem:[%s1503_s3 + $0x10] sm:$0xff]  ;;  %v1036_v14 = vld [vmem:[#allocation9 + $0x8] sm:$0xff]   ;;  %v152_v15 = vld [vmem:[%s1503_s3 + $0x8] sm:$0xff]  ;;  %v1156_v18 = vmov 0.0  }
  0x48   :  { %s1299_s22 = sld [smem:[#allocation4 + $0x7]]  ;;  %s1301_s23 = sld [smem:[#allocation4 + $0x8]]  ;;  %855 = vmatprep.subr.bf16.mxu1 %v1034_v9  ;;  %1031 = vset.pattern.permute.xlu0 %v1155_v12  ;;  %v154_v16 = vld [vmem:[%s1503_s3 + $0x18] sm:$0xff]  ;;  %v260_v17 = vld [vmem:[%s1505_s5] sm:$0xff]  ;;  %vm1157_vm1 = vmmov 0  }
  0x49   :  { %s1303_s6 = sld [smem:[#allocation4 + $0x9]]  ;;  %s1305_s24 = sld [smem:[#allocation4 + $0xa]]  ;;  %157 = vperm.xlu0 %1031, %v151_v11   ;;  %1032 = vset.pattern.permute.xlu1 %v1155_v12  ;;  %v257_v37 = vld [vmem:[#allocation11] sm:$0xf] }
  0x4a   :  { %167 = vperm.xlu1 %1032, %v153_v13   ;;  %s132_s3 = sld [smem:[#allocation4]]  ;;  %869 = vmatprep.subr.bf16.mxu0 %v1156_v18 }
  0x4b   :  { %856 = vmatpush3.bf16.msra.mxu1 %v1034_v9 }
  0x4c   :  { %861 = vmatprep.subr.bf16.mxu1 %v1156_v18 }
  0x4d   :  { %162 = vperm.xlu0 %1031, %v152_v15  }
  0x4e   :  { %858 = vmatmul.mubr.msk.bf16.vlgmr.msra.gmra.mrb[0].mxu1 %vm197_vm0, %v1036_v14  ;;  %172 = vperm.xlu1 %1032, %v154_v16  }
  0x4f   :  { %865 = vmatprep.mubr.msk.bf16.mxu1 %vm1157_vm1, %v1156_v18 }
  0x50   :  { %v309_v40 = vstv %s132_s3 }
  0x51   :  { %263 = vperm.xlu0 %1031, %v260_v17  }
  0xc8   :  { %v158_v20 = vpop.permute.xlu0 %157 }
  0xc9   :  { %v168_v19 = vpop.permute.xlu1 %167 }
  0xcc   :  { %v163_v27 = vpop.permute.xlu0 %162 }
  0xcd   :  { %v173_v22 = vpop.permute.xlu1 %172 }
  0xd0   :  { %v264_v38 = vpop.permute.xlu0 %263 }
 0x121   :  { %v859_v21 = vpop.f32.mrb[0].mxu1 }
 0x122   :  { %v247_v23 = vadd.f32 %v859_v21, %v168_v19  ;;  %v238_v24 = vpop.f32.mrb[1].mxu1 }
 0x123   :  { %v239_v25 = vadd.f32 %v238_v24, %v158_v20  ;;  %v860_v26 = vpop.f32.mrb[2].mxu1 }
 0x124   :  { %v250_v28 = vadd.f32 %v860_v26, %v173_v22  ;;  %v241_v29 = vpop.f32.mrb[3].mxu1  ;;  %v255_v31 = vmax.f32 %v247_v23, 0.0 }
 0x125   :  { %v242_v30 = vadd.f32 %v241_v29, %v163_v27  ;;  %v253_v33 = vmax.f32 %v239_v25, 0.0 }
 0x126   :  { %v256_v32 = vmax.f32 %v250_v28, 0.0 }
 0x127   :  { %v254_v34 = vmax.f32 %v242_v30, 0.0 }
 0x128   :  { %v259_v35 = vpack.c.bf16 %v256_v32, %v255_v31 }
 0x129   :  { %v258_v36 = vpack.c.bf16 %v254_v34, %v253_v33 }
 0x12b   :  { %862 = vmatpush3.bf16.msra.mxu1 %v258_v36 }
 0x12c   :  { %863 = vmatprep.subr.bf16.mxu1 %v1156_v18 }
 0x12f   :  { %864 = vmatpush3.bf16.msra.mxu1 %v259_v35 }
 0x130   :  { %889 = vmatprep.subr.bf16.mxu1 %v1250_v0 }
 0x132   :  { %866 = vmatmul.mubr.msk.bf16.vlgmr.msra.gmra.mrb[4].mxu1 %vm197_vm0, %v257_v37 }
 0x205   :  { %v303_v39 = vpop.f32.mrb[4].mxu1 }
 0x206   :  { %v1329_v41 = vadd.f32 %v303_v39, %v264_v38  ;;  %v867_v42 = vpop.f32.mrb[5].mxu1 }
 0x207   :  { %v306_v43 = vpop.f32.mrb[6].mxu1 }
 0x208   :  { %v1332_v44 = vmul.f32 %v309_v40, %v1329_v41  ;;  %v868_v45 = vpop.f32.mrb[7].mxu1 }
 0x209   :  { %1145 = dma.done.wait [#allocation3], 1024 }
 0x20a   :  { %1146 = vsyncadd [#allocation3], 4294966272  ;;  %890 = vmatpush3.bf16.msra.mxu1 %v1250_v0  ;;  %905 = vmatprep.mubr.bf16.mxu1 %v1250_v0  ;;  %v323_v46 = vpack.c.bf16 %v1329_v41, %v1329_v41  ;;  %v364_v21 = vstv %s1287_s16  ;;  %v514_v23 = vstv %s1289_s17  ;;  %v517_v25 = vstv %s1291_s18  ;;  %s1158_s5 = smov [#allocation12]  }
 0x20b   :  { %891 = vmatprep.subr.bf16.mxu1 %v1255_v1  ;;  %870 = vmatpush3.bf16.msra.mxu0 %v1250_v0  ;;  %v562_v35 = vstv %s1293_s19  ;;  %v565_v37 = vstv %s1295_s20  ;;  %s733_s30 = sshll.u32 %s1158_s5, 4  ;;  %s734_s30 = int_to_ptr.vmem [resolvable:$true] %s733_s30 }
 0x20c   :  { %871 = vmatprep.subr.bf16.mxu0 %v1156_v18  ;;  %885 = vmatprep.mubr.msk.bf16.mxu0 %vm1157_vm1, %v1156_v18  ;;  %s1117_s8 = scalar_lea.vmem %s734_s30, 128  ;;  %p1122_p0 = scmp.lt.s32.totalorder %s734_s30, %s734_s30 }
 0x20d   :  { %p1118_p13 = scmp.ne.s32.totalorder %s734_s30, %s1117_s8  ;;  %p1123_p1 = scmp.lt.s32.totalorder %s1117_s8, %s1117_s8 }
 0x20e   :  { %892 = vmatpush3.bf16.msra.mxu1 %v1255_v1 }
 0x20f   :  { %893 = vmatprep.subr.bf16.mxu1 %v1260_v2  ;;  %872 = vmatpush3.bf16.msra.mxu0 %v1255_v1  ;;  %p1124_p2 = por %p1123_p1, %p1122_p0 }
 0x210   :  { %873 = vmatprep.subr.bf16.mxu0 %v1156_v18 }
 0x211   :  { %p1125_p3 = pnand %p1124_p2, %p1118_p13 }
 0x212   :  { %894 = vmatpush3.bf16.msra.mxu1 %v1260_v2 }
 0x213   :  { %895 = vmatprep.subr.bf16.mxu1 %v1265_v3  ;;  %874 = vmatpush3.bf16.msra.mxu0 %v1260_v2 }
 0x214   :  { %875 = vmatprep.subr.bf16.mxu0 %v1156_v18 }
 0x216   :  { %896 = vmatpush3.bf16.msra.mxu1 %v1265_v3 }
 0x217   :  { %897 = vmatprep.subr.bf16.mxu1 %v1270_v4  ;;  %876 = vmatpush3.bf16.msra.mxu0 %v1265_v3 }
 0x218   :  { %877 = vmatprep.subr.bf16.mxu0 %v1156_v18 }
 0x21a   :  { %898 = vmatpush3.bf16.msra.mxu1 %v1270_v4 }
 0x21b   :  { %899 = vmatprep.subr.bf16.mxu1 %v1275_v5  ;;  %878 = vmatpush3.bf16.msra.mxu0 %v1270_v4 }
 0x21c   :  { %879 = vmatprep.subr.bf16.mxu0 %v1156_v18 }
 0x21e   :  { %900 = vmatpush3.bf16.msra.mxu1 %v1275_v5 }
 0x21f   :  { %901 = vmatprep.subr.bf16.mxu1 %v1280_v6  ;;  %880 = vmatpush3.bf16.msra.mxu0 %v1275_v5 }
 0x220   :  { %881 = vmatprep.subr.bf16.mxu0 %v1156_v18 }
 0x222   :  { %902 = vmatpush3.bf16.msra.mxu1 %v1280_v6 }
 0x223   :  { %903 = vmatprep.subr.bf16.mxu1 %v1285_v7  ;;  %882 = vmatpush3.bf16.msra.mxu0 %v1280_v6 }
 0x224   :  { %883 = vmatprep.subr.bf16.mxu0 %v1156_v18 }
 0x226   :  { %904 = vmatpush3.bf16.msra.mxu1 %v1285_v7 }
 0x227   :  { %884 = vmatpush3.bf16.msra.mxu0 %v1285_v7  ;;  %941 = vmatprep.subr.bf16.mxu1 %v1156_v18 }
 0x228   :  { %921 = vmatprep.subr.bf16.mxu0 %v1156_v18 }
 0x229   :  { %906 = vmatmul.mubr.bf16.vlgmr.msra.gmra.mrb[8].mxu1 %v1255_v1 }
 0x22a   :  { %909 = vmatprep.mubr.bf16.mxu1 %v1260_v2  ;;  %886 = vmatmul.mubr.bf16.vlgmr.msra.gmra.mrb[0].mxu0 %v323_v46 }
 0x22b   :  { %937 = vmatprep.mubr.msk.bf16.mxu0 %vm1157_vm1, %v1156_v18 }
 0x231   :  { %910 = vmatmul.mubr.bf16.gmra.mrb[12].mxu1 %v1265_v3 }
 0x232   :  { %913 = vmatprep.mubr.bf16.mxu1 %v1270_v4 }
 0x239   :  { %914 = vmatmul.mubr.bf16.gmra.mrb[16].mxu1 %v1275_v5 }
 0x23a   :  { %917 = vmatprep.mubr.bf16.mxu1 %v1280_v6 }
 0x241   :  { %918 = vmatmul.mubr.bf16.gmra.mrb[20].mxu1 %v1285_v7 }
 0x242   :  { %957 = vmatprep.mubr.msk.bf16.mxu1 %vm1157_vm1, %v1156_v18 }
 0x2fc   :  { %v907_v47 = vpop.f32.mrb[8].mxu1 }
 0x2fd   :  { %v401_v48 = vpop.f32.mrb[9].mxu1  ;;  %v1384_v49 = vpop.f32.mrb[0].mxu0 }
 0x2fe   :  { %v908_v50 = vpop.f32.mrb[10].mxu1  ;;  %v887_v51 = vpop.f32.mrb[1].mxu0  ;;  %v472_v20 = vpack.c.bf16 %v1384_v49, %v1329_v41  ;;  %v365_v22 = vmul.f32 %v364_v21, %v1384_v49 }
 0x2ff   :  { %v1386_v52 = vpack.c.bf16 %v908_v50, %v907_v47  ;;  %v404_v53 = vpop.f32.mrb[11].mxu1  ;;  %v361_v54 = vpop.f32.mrb[2].mxu0  ;;  %v658_v51 = vstv %s1301_s23 }
 0x300   :  { %v1388_v55 = vpack.c.bf16 %v404_v53, %v401_v48  ;;  %v888_v56 = vpop.f32.mrb[3].mxu0  ;;  %v366_v26 = vadd.f32 %v365_v22, %v1332_v44 }
 0x302   :  { %922 = vmatpush3.bf16.msra.mxu0 %v1388_v55  ;;  %942 = vmatpush3.bf16.msra.mxu1 %v1388_v55 }
 0x303   :  { %923 = vmatprep.subr.bf16.mxu0 %v1156_v18  ;;  %943 = vmatprep.subr.bf16.mxu1 %v1156_v18 }
 0x304   :  { %v911_v57 = vpop.f32.mrb[12].mxu1 }
 0x305   :  { %v417_v58 = vpop.f32.mrb[13].mxu1 }
 0x306   :  { %v912_v59 = vpop.f32.mrb[14].mxu1  ;;  %924 = vmatpush3.bf16.msra.mxu0 %v1386_v52  ;;  %944 = vmatpush3.bf16.msra.mxu1 %v1386_v52 }
 0x307   :  { %v1396_v60 = vpack.c.bf16 %v912_v59, %v911_v57  ;;  %v420_v61 = vpop.f32.mrb[15].mxu1  ;;  %925 = vmatprep.subr.bf16.mxu0 %v1156_v18  ;;  %945 = vmatprep.subr.bf16.mxu1 %v1156_v18  ;;  %v705_v59 = vstv %s1305_s24 }
 0x308   :  { %v1400_v62 = vpack.c.bf16 %v420_v61, %v417_v58 }
 0x30a   :  { %926 = vmatpush3.bf16.msra.mxu0 %v1400_v62  ;;  %946 = vmatpush3.bf16.msra.mxu1 %v1400_v62 }
 0x30b   :  { %927 = vmatprep.subr.bf16.mxu0 %v1156_v18  ;;  %947 = vmatprep.subr.bf16.mxu1 %v1156_v18 }
 0x30c   :  { %v915_v63 = vpop.f32.mrb[16].mxu1 }
 0x30d   :  { %v433_v8 = vpop.f32.mrb[17].mxu1 }
 0x30e   :  { %v916_v9 = vpop.f32.mrb[18].mxu1  ;;  %928 = vmatpush3.bf16.msra.mxu0 %v1396_v60  ;;  %948 = vmatpush3.bf16.msra.mxu1 %v1396_v60 }
 0x30f   :  { %v1408_v10 = vpack.c.bf16 %v916_v9, %v915_v63  ;;  %v436_v11 = vpop.f32.mrb[19].mxu1  ;;  %929 = vmatprep.subr.bf16.mxu0 %v1156_v18  ;;  %949 = vmatprep.subr.bf16.mxu1 %v1156_v18 }
 0x310   :  { %v1412_v12 = vpack.c.bf16 %v436_v11, %v433_v8 }
 0x312   :  { %930 = vmatpush3.bf16.msra.mxu0 %v1412_v12  ;;  %950 = vmatpush3.bf16.msra.mxu1 %v1412_v12 }
 0x313   :  { %931 = vmatprep.subr.bf16.mxu0 %v1156_v18  ;;  %951 = vmatprep.subr.bf16.mxu1 %v1156_v18 }
 0x314   :  { %v919_v13 = vpop.f32.mrb[20].mxu1 }
 0x315   :  { %v449_v14 = vpop.f32.mrb[21].mxu1 }
 0x316   :  { %v920_v15 = vpop.f32.mrb[22].mxu1  ;;  %932 = vmatpush3.bf16.msra.mxu0 %v1408_v10  ;;  %952 = vmatpush3.bf16.msra.mxu1 %v1408_v10 }
 0x317   :  { %v471_v16 = vpack.c.bf16 %v920_v15, %v919_v13  ;;  %v452_v17 = vpop.f32.mrb[23].mxu1  ;;  %933 = vmatprep.subr.bf16.mxu0 %v1156_v18  ;;  %953 = vmatprep.subr.bf16.mxu1 %v1156_v18 }
 0x318   :  { %v470_v19 = vpack.c.bf16 %v452_v17, %v449_v14 }
 0x31a   :  { %934 = vmatpush3.bf16.msra.mxu0 %v470_v19  ;;  %954 = vmatpush3.bf16.msra.mxu1 %v470_v19 }
 0x31b   :  { %935 = vmatprep.subr.bf16.mxu0 %v1156_v18  ;;  %955 = vmatprep.subr.bf16.mxu1 %v1156_v18 }
 0x31e   :  { %936 = vmatpush3.bf16.msra.mxu0 %v471_v16  ;;  %956 = vmatpush3.bf16.msra.mxu1 %v471_v16 }
 0x31f   :  { %961 = vmatprep.subr.bf16.mxu0 %v1156_v18  ;;  %981 = vmatprep.subr.bf16.mxu1 %v1156_v18 }
 0x321   :  { %938 = vmatmul.mubr.bf16.vlgmr.msra.gmra.mrb[4].mxu0 %v472_v20 }
 0x322   :  { %962 = vmatpush3.bf16.msra.mxu0 %v1388_v55  ;;  %977 = vmatprep.mubr.msk.bf16.mxu0 %vm1157_vm1, %v1156_v18 }
 0x323   :  { %963 = vmatprep.subr.bf16.mxu0 %v1156_v18 }
 0x326   :  { %964 = vmatpush3.bf16.msra.mxu0 %v1386_v52 }
 0x327   :  { %965 = vmatprep.subr.bf16.mxu0 %v1156_v18 }
 0x32a   :  { %966 = vmatpush3.bf16.msra.mxu0 %v1400_v62 }
 0x32b   :  { %967 = vmatprep.subr.bf16.mxu0 %v1156_v18 }
 0x32e   :  { %968 = vmatpush3.bf16.msra.mxu0 %v1396_v60 }
 0x32f   :  { %969 = vmatprep.subr.bf16.mxu0 %v1156_v18 }
 0x332   :  { %970 = vmatpush3.bf16.msra.mxu0 %v1412_v12 }
 0x333   :  { %971 = vmatprep.subr.bf16.mxu0 %v1156_v18 }
 0x336   :  { %972 = vmatpush3.bf16.msra.mxu0 %v1408_v10 }
 0x337   :  { %973 = vmatprep.subr.bf16.mxu0 %v1156_v18 }
 0x33a   :  { %974 = vmatpush3.bf16.msra.mxu0 %v470_v19 }
 0x33b   :  { %975 = vmatprep.subr.bf16.mxu0 %v1156_v18 }
 0x33e   :  { %976 = vmatpush3.bf16.msra.mxu0 %v471_v16 }
 0x33f   :  { %1001 = vmatprep.subr.bf16.mxu0 %v1156_v18 }
 0x3f4   :  { %v507_v24 = vpop.f32.mrb[4].mxu0 }
 0x3f5   :  { %v515_v27 = vmul.f32 %v514_v23, %v507_v24  ;;  %v939_v28 = vpop.f32.mrb[5].mxu0 }
 0x3f6   :  { %v510_v29 = vpop.f32.mrb[6].mxu0 }
 0x3f7   :  { %v516_v30 = vadd.f32 %v515_v27, %v366_v26  ;;  %v518_v31 = vmul.f32 %v517_v25, %v510_v29  ;;  %v520_v32 = vpack.c.bf16 %v510_v29, %v507_v24  ;;  %v940_v33 = vpop.f32.mrb[7].mxu0 }
 0x3f9   :  { %v519_v34 = vadd.f32 %v518_v31, %v516_v30  ;;  %958 = vmatmul.mubr.bf16.vlgmr.msra.gmra.mrb[24].mxu1 %v520_v32 }
 0x3fa   :  { %982 = vmatpush3.bf16.msra.mxu1 %v1388_v55  ;;  %997 = vmatprep.mubr.msk.bf16.mxu1 %vm1157_vm1, %v1156_v18 }
 0x3fb   :  { %983 = vmatprep.subr.bf16.mxu1 %v1156_v18 }
 0x3fe   :  { %984 = vmatpush3.bf16.msra.mxu1 %v1386_v52  ;;  %v661_v52 = vstv %s1303_s6 }
 0x3ff   :  { %985 = vmatprep.subr.bf16.mxu1 %v1156_v18 }
 0x402   :  { %986 = vmatpush3.bf16.msra.mxu1 %v1400_v62 }
 0x403   :  { %987 = vmatprep.subr.bf16.mxu1 %v1156_v18 }
 0x406   :  { %988 = vmatpush3.bf16.msra.mxu1 %v1396_v60 }
 0x407   :  { %989 = vmatprep.subr.bf16.mxu1 %v1156_v18 }
 0x40a   :  { %990 = vmatpush3.bf16.msra.mxu1 %v1412_v12 }
 0x40b   :  { %991 = vmatprep.subr.bf16.mxu1 %v1156_v18 }
 0x40e   :  { %992 = vmatpush3.bf16.msra.mxu1 %v1408_v10 }
 0x40f   :  { %993 = vmatprep.subr.bf16.mxu1 %v1156_v18 }
 0x412   :  { %994 = vmatpush3.bf16.msra.mxu1 %v470_v19 }
 0x413   :  { %995 = vmatprep.subr.bf16.mxu1 %v1156_v18 }
 0x416   :  { %996 = vmatpush3.bf16.msra.mxu1 %v471_v16 }
 0x4cc   :  { %v555_v36 = vpop.f32.mrb[24].mxu1 }
 0x4cd   :  { %v563_v38 = vmul.f32 %v562_v35, %v555_v36  ;;  %v959_v39 = vpop.f32.mrb[25].mxu1 }
 0x4ce   :  { %v558_v40 = vpop.f32.mrb[26].mxu1 }
 0x4cf   :  { %v564_v41 = vadd.f32 %v563_v38, %v519_v34  ;;  %v566_v42 = vmul.f32 %v565_v37, %v558_v40  ;;  %v568_v43 = vpack.c.bf16 %v558_v40, %v555_v36  ;;  %v960_v44 = vpop.f32.mrb[27].mxu1 }
 0x4d1   :  { %v567_v45 = vadd.f32 %v566_v42, %v564_v41  ;;  %978 = vmatmul.mubr.bf16.vlgmr.msra.gmra.mrb[8].mxu0 %v568_v43 }
 0x4d2   :  { %1002 = vmatpush3.bf16.msra.mxu0 %v1250_v0  ;;  %1017 = vmatprep.mubr.msk.bf16.mxu0 %vm1157_vm1, %v1156_v18  ;;  %v610_v0 = vstv %s1297_s21 }
 0x4d3   :  { %1003 = vmatprep.subr.bf16.mxu0 %v1156_v18 }
 0x4d6   :  { %1004 = vmatpush3.bf16.msra.mxu0 %v1255_v1 }
 0x4d7   :  { %1005 = vmatprep.subr.bf16.mxu0 %v1156_v18 }
 0x4da   :  { %1006 = vmatpush3.bf16.msra.mxu0 %v1260_v2  ;;  %v613_v2 = vstv %s1299_s22 }
 0x4db   :  { %1007 = vmatprep.subr.bf16.mxu0 %v1156_v18 }
 0x4de   :  { %1008 = vmatpush3.bf16.msra.mxu0 %v1265_v3 }
 0x4df   :  { %1009 = vmatprep.subr.bf16.mxu0 %v1156_v18 }
 0x4e2   :  { %1010 = vmatpush3.bf16.msra.mxu0 %v1270_v4 }
 0x4e3   :  { %1011 = vmatprep.subr.bf16.mxu0 %v1156_v18 }
 0x4e6   :  { %1012 = vmatpush3.bf16.msra.mxu0 %v1275_v5 }
 0x4e7   :  { %1013 = vmatprep.subr.bf16.mxu0 %v1156_v18 }
 0x4ea   :  { %1014 = vmatpush3.bf16.msra.mxu0 %v1280_v6 }
 0x4eb   :  { %1015 = vmatprep.subr.bf16.mxu0 %v1156_v18 }
 0x4ee   :  { %1016 = vmatpush3.bf16.msra.mxu0 %v1285_v7 }
 0x5a4   :  { %v603_v1 = vpop.f32.mrb[8].mxu0 }
 0x5a5   :  { %v611_v3 = vmul.f32 %v610_v0, %v603_v1  ;;  %v979_v46 = vpop.f32.mrb[9].mxu0 }
 0x5a6   :  { %v606_v4 = vpop.f32.mrb[10].mxu0 }
 0x5a7   :  { %v612_v47 = vadd.f32 %v611_v3, %v567_v45  ;;  %v614_v48 = vmul.f32 %v613_v2, %v606_v4  ;;  %v616_v49 = vpack.c.bf16 %v606_v4, %v603_v1  ;;  %v980_v5 = vpop.f32.mrb[11].mxu0 }
 0x5a9   :  { %v615_v50 = vadd.f32 %v614_v48, %v612_v47  ;;  %998 = vmatmul.mubr.bf16.vlgmr.msra.gmra.mrb[28].mxu1 %v616_v49 }
 0x67c   :  { %v651_v6 = vpop.f32.mrb[28].mxu1 }
 0x67d   :  { %v659_v18 = vmul.f32 %v658_v51, %v651_v6  ;;  %v999_v53 = vpop.f32.mrb[29].mxu1 }
 0x67e   :  { %v654_v54 = vpop.f32.mrb[30].mxu1 }
 0x67f   :  { %v660_v7 = vadd.f32 %v659_v18, %v615_v50  ;;  %v662_v55 = vmul.f32 %v661_v52, %v654_v54  ;;  %v664_v56 = vpack.c.bf16 %v654_v54, %v654_v54  ;;  %v1000_v57 = vpop.f32.mrb[31].mxu1 }
 0x681   :  { %v663_v58 = vadd.f32 %v662_v55, %v660_v7  ;;  %1018 = vmatmul.mubr.bf16.vlgmr.msra.gmra.mrb[12].mxu0 %v664_v56 }
 0x754   :  { %v699_v60 = vpop.f32.mrb[12].mxu0 }
 0x755   :  { %v706_v61 = vmul.f32 %v705_v59, %v699_v60  ;;  %v1019_v62 = vpop.f32.mrb[13].mxu0 }
 0x756   :  { %v702_v63 = vpop.f32.mrb[14].mxu0 }
 0x757   :  { %v707_v8 = vadd.f32 %v706_v61, %v663_v58  ;;  %v1020_v9 = vpop.f32.mrb[15].mxu0 }
 0x759   :  { %v708_v10 = vrot.slane %v707_v8, 4 }
 0x75b   :  { %v709_v11 = vmax.f32 %v707_v8, %v708_v10 }
 0x75d   :  { %v710_v12 = vrot.slane %v709_v11, 2 }
 0x75f   :  { %v711_v13 = vmax.f32 %v709_v11, %v710_v12 }
 0x761   :  { %v712_v14 = vrot.slane %v711_v13, 1 }
 0x763   :  { %v713_v15 = vmax.f32 %v711_v13, %v712_v14 }
 0x765   :  { %v714_v16 = vsub.f32 %v707_v8, %v713_v15 }
 0x767   :  { %v715_v17 = vmul.f32 1.442695, %v714_v16 }
 0x769   :  { %1037 = vpow2.f32 %v715_v17 }
 0x773   :  { %v1038_v19 = vpop.eup %1037 }
 0x774   :  { %v717_v20 = vrot.slane %v1038_v19, 4 }
 0x776   :  { %v718_v21 = vadd.f32 %v1038_v19, %v717_v20 }
 0x778   :  { %v719_v22 = vrot.slane %v718_v21, 2 }
 0x77a   :  { %v720_v23 = vadd.f32 %v719_v22, %v718_v21 }
 0x77c   :  { %v721_v24 = vrot.slane %v720_v23, 1 }
 0x77e   :  { %v722_v25 = vadd.f32 %v721_v24, %v720_v23 }
 0x780   :  { %1039 = vlog2.f32 %v722_v25 }
 0x78a   :  { %v1040_v26 = vpop.eup %1039 }
 0x78b   :  { %v724_v27 = vmul.f32 0.6931472, %v1040_v26 }
 0x78d   :  { %v725_v28 = vsub.f32 %v714_v16, %v724_v27 }
 0x78f   :  { %726 = vst [vmem:[#allocation12] sm:$0xff] %v725_v28 }
 0x790   :  { %1128 = shalt.err (!%p1125_p3)
}
 0x791   :  { %s1129_s11 = scalar_lea.hbm %s1507_s7, 128 }
 0x792   :  { %p1130_p4 = scmp.ne.s32.totalorder %s1507_s7, %s1129_s11  ;;  %p1133_p5 = scmp.lt.u32.totalorder %s1129_s11, %s1507_s7 }
 0x794   :  { %p1135_p6 = pnand %p1133_p5, %p1130_p4 }
 0x796   :  { %1138 = shalt.err (!%p1135_p6)
}
 0x797   :  { %736 = dma.vmem_to_hbm [thread:$0]  %s734_s30, 128, %s1507_s7, [#allocation6]  }
 0x798   :  { %1147 = dma.done.wait [#allocation6], 128  }
 0x799   :  { %1148 = vsyncadd [#allocation6], 4294967168 }
 0x79a   :  { %740 = vsyncpa [#allocation5], 1 }
 0x79b   :  { %741 = vsyncpa [#allocation10], 1 }
 0x79c   :  { %742 = vsyncpa [#allocation6], 1 }
 0x79d   :  { %743 = vsyncpa [#allocation7], 1 }
 0x79e   :  { %744 = vsyncmov [#allocation3] }
 0x7a1   :  { %s745_s19 = vpop.sfrf %744 }
 0x7a2   :  { %p775_p7 = scmp.ne.s32.totalorder %s745_s19, 0 }
 0x7a4   :  { %749 = shalt.err (%p775_p7)  }

</bundles_post_ra>
